<compile_context>
chip_gen: v7x
topology: tpu7x:2x2x1
jax: 0.10.0
libtpu: 0.0.40
codegen_flags: <defaults>
</compile_context>

<pallas_src>
import functools

import jax
import jax.numpy as jnp
from jax import lax
from jax.experimental import pallas as pl
from jax.experimental.pallas import tpu as pltpu

IN_DIM = 11
HID_DIM = 20
OUT_DIM = 2
LANE = 128


def mlp_fused_kernel(x_ref, w1_ref, b1_ref, w2_ref, b2_ref, logits_ref, pred_ref):
    # x_ref      : [TB, IN_DIM]      (batch-major, as stored in HBM)
    # w1_ref     : [HID_DIM, IN_DIM]
    # b1_ref     : [HID_DIM, 1]
    # w2_ref     : [OUT_DIM, HID_DIM]
    # b2_ref     : [OUT_DIM, 1]
    # logits_ref : [OUT_DIM, TB]     (feature-major -> lane-dense stores)
    # pred_ref   : [1, TB] int8      (fused predict() epilogue)
    x = x_ref[...].astype(jnp.float32)
    # h[HID, TB] = w1 @ x^T : contract dim 1 of w1 with dim 1 of x (no transpose op).
    h = lax.dot_general(
        w1_ref[...], x,
        dimension_numbers=(((1,), (1,)), ((), ())),
        preferred_element_type=jnp.float32,
    )
    h = jnp.tanh(h + b1_ref[...])
    y = jnp.dot(w2_ref[...], h, preferred_element_type=jnp.float32)  # [OUT, TB]
    y = y + b2_ref[...]
    logits_ref[...] = y.astype(logits_ref.dtype)
    # torch predict(): append 0 iff softmax[0] > softmax[1], else 1  <=>  y[1] >= y[0].
    pred_ref[...] = (y[1:2, :] >= y[0:1, :]).astype(jnp.int8)


def _round_up(n, m):
    return ((n + m - 1) // m) * m


@functools.partial(jax.jit, static_argnames=("tb_cap",))
def nn_model_fused(x, w1, b1, w2, b2, *, tb_cap=32768):
    """x: [B, IN_DIM] (f32 or bf16). Returns (logits [B, OUT_DIM] f32, preds [B] int8).

    tb_cap: max batch-tile (lanes). Forced to a multiple of 128. Default 32768 fits the
    double-buffered blocks (~34 MB) under every generation's VMEM; raise toward 64-96K on
    v5e/v6e if B is huge and you bump vmem_limit_bytes accordingly.
    """
    B = x.shape[0]
    tb_cap = max(LANE, (int(tb_cap) // LANE) * LANE)   # guard: lane-multiple tile
    tb = min(tb_cap, _round_up(B, LANE))
    grid = (pl.cdiv(B, tb),)                            # ragged last tile handled by Pallas

    in_bytes = x.size * jnp.dtype(x.dtype).itemsize
    w_bytes = 4 * (w1.size + b1.size + w2.size + b2.size)
    cost = pl.CostEstimate(
        flops=2 * (IN_DIM * HID_DIM + HID_DIM * OUT_DIM) * B,
        transcendentals=HID_DIM * B,
        bytes_accessed=in_bytes + w_bytes + OUT_DIM * B * 4 + B,
    )

    logits_t, preds_row = pl.pallas_call(
        mlp_fused_kernel,
        out_shape=(
            jax.ShapeDtypeStruct((OUT_DIM, B), jnp.float32),
            jax.ShapeDtypeStruct((1, B), jnp.int8),
        ),
        grid=grid,
        in_specs=[
            # Batch-tiled activations, native [B, IN_DIM] layout (single HBM read of x).
            pl.BlockSpec((tb, IN_DIM), lambda i: (i, 0)),
            # Weights / biases: constant block index -> fetched once, stay in VMEM.
            pl.BlockSpec((HID_DIM, IN_DIM), lambda i: (0, 0)),
            pl.BlockSpec((HID_DIM, 1), lambda i: (0, 0)),
            pl.BlockSpec((OUT_DIM, HID_DIM), lambda i: (0, 0)),
            pl.BlockSpec((OUT_DIM, 1), lambda i: (0, 0)),
        ],
        out_specs=(
            pl.BlockSpec((OUT_DIM, tb), lambda i: (0, i)),
            pl.BlockSpec((1, tb), lambda i: (0, i)),
        ),
        compiler_params=pltpu.CompilerParams(
            dimension_semantics=("parallel",),        # independent batch tiles (2 TCs on v7x)
            vmem_limit_bytes=48 * 1024 * 1024,        # covers tb=32K double-buffered blocks
        ),
        cost_estimate=cost,
    )(x, w1, b1, w2, b2)

    logits = logits_t.T                 # [B, OUT_DIM], matches PyTorch forward layout
    preds = preds_row[0, :]
    return logits, preds


def nn_model_forward(x, w1, b1, w2, b2):
    """Equivalent of NN_model.forward."""
    return nn_model_fused(x, w1, b1, w2, b2)[0]


def predict(x, w1, b1, w2, b2):
    """Equivalent of NN_model.predict (argmax fused in-kernel; softmax is redundant)."""
    return nn_model_fused(x, w1, b1, w2, b2)[1]


def init_params(key):
    # PyTorch nn.Linear default init: U(-1/sqrt(fan_in), 1/sqrt(fan_in)),
    # weights stored [out_features, in_features] like torch.
    k1, k2, k3, k4 = jax.random.split(key, 4)
    bound1 = 1.0 / jnp.sqrt(jnp.float32(IN_DIM))
    bound2 = 1.0 / jnp.sqrt(jnp.float32(HID_DIM))
    w1 = jax.random.uniform(k1, (HID_DIM, IN_DIM), jnp.float32, -bound1, bound1)
    b1 = jax.random.uniform(k2, (HID_DIM, 1), jnp.float32, -bound1, bound1)
    w2 = jax.random.uniform(k3, (OUT_DIM, HID_DIM), jnp.float32, -bound2, bound2)
    b2 = jax.random.uniform(k4, (OUT_DIM, 1), jnp.float32, -bound2, bound2)
    return w1, b1, w2, b2


if __name__ == "__main__":
    key = jax.random.PRNGKey(0)
    pk, xk = jax.random.split(key)
    w1, b1, w2, b2 = init_params(pk)

    # Small batch (single, partially-filled tile) and a multi-tile ragged batch.
    for B in (8, 300):
        x = jax.random.normal(jax.random.fold_in(xk, B), (B, IN_DIM), jnp.float32)

        logits, preds = nn_model_fused(x, w1, b1, w2, b2, tb_cap=128)
        logits, preds = jax.block_until_ready((logits, preds))

        # Pure-JAX reference (same math as the PyTorch module).
        ref = jnp.tanh(x @ w1.T + b1.T) @ w2.T + b2.T
        assert logits.shape == (B, OUT_DIM)
        assert jnp.allclose(logits, ref, atol=1e-5, rtol=1e-5)

        expect_pred = (logits[:, 1] >= logits[:, 0]).astype(jnp.int32)
        assert preds.shape == (B,)
        assert jnp.array_equal(preds.astype(jnp.int32), expect_pred)

    # bf16 input path (halves the dominant HBM stream on large B); math stays f32.
    B = 200
    xf = jax.random.normal(jax.random.fold_in(xk, 999), (B, IN_DIM), jnp.float32)
    xb = xf.astype(jnp.bfloat16)
    logits_bf, preds_bf = jax.block_until_ready(
        nn_model_fused(xb, w1, b1, w2, b2, tb_cap=128))
    ref_bf = jnp.tanh(xb.astype(jnp.float32) @ w1.T + b1.T) @ w2.T + b2.T
    assert jnp.allclose(logits_bf, ref_bf, atol=5e-3, rtol=5e-3)
    assert jnp.array_equal(
        preds_bf.astype(jnp.int32),
        (ref_bf[:, 1] >= ref_bf[:, 0]).astype(jnp.int32))

    print("KERNEL_OK")
</pallas_src>

<mosaic_0001>
module attributes {stable_mosaic.version = 11 : i64} {
  func.func @mlp_fused_kernel(%arg0: i32, %arg1: memref<128x11xf32, #tpu.memory_space<vmem>>, %arg2: memref<20x11xf32, #tpu.memory_space<vmem>>, %arg3: memref<20x1xf32, #tpu.memory_space<vmem>>, %arg4: memref<2x20xf32, #tpu.memory_space<vmem>>, %arg5: memref<2x1xf32, #tpu.memory_space<vmem>>, %arg6: memref<2x128xf32, #tpu.memory_space<vmem>>, %arg7: memref<1x128xi8, #tpu.memory_space<vmem>>) attributes {dimension_semantics = [#tpu.dimension_semantics<parallel>], iteration_bounds = array<i64: 1>, scalar_prefetch = 0 : i64, scratch_operands = 0 : i64, tpu.core_type = #tpu.core_type<tc>, window_params = [{transform_indices = @transform_0, window_bounds = array<i64: 128, 11>}, {pipeline_mode = #tpu.pipeline_mode<synchronous>, transform_indices = @transform_1, window_bounds = array<i64: 20, 11>}, {pipeline_mode = #tpu.pipeline_mode<synchronous>, transform_indices = @transform_2, window_bounds = array<i64: 20, 1>}, {pipeline_mode = #tpu.pipeline_mode<synchronous>, transform_indices = @transform_3, window_bounds = array<i64: 2, 20>}, {pipeline_mode = #tpu.pipeline_mode<synchronous>, transform_indices = @transform_4, window_bounds = array<i64: 2, 1>}, {transform_indices = @transform_5, window_bounds = array<i64: 2, 128>}, {transform_indices = @transform_6, window_bounds = array<i64: 1, 128>}]} {
    %c0 = arith.constant 0 : index
    %c0_0 = arith.constant 0 : index
    %0 = vector.load %arg1[%c0, %c0_0] : memref<128x11xf32, #tpu.memory_space<vmem>>, vector<128x11xf32>
    %c0_1 = arith.constant 0 : index
    %c0_2 = arith.constant 0 : index
    %1 = vector.load %arg2[%c0_1, %c0_2] : memref<20x11xf32, #tpu.memory_space<vmem>>, vector<20x11xf32>
    %cst = arith.constant dense<0.000000e+00> : vector<20x128xf32>
    %2 = tpu.matmul %1, %0, %cst {dimension_numbers = #tpu.dot_dimension_numbers<[1], [1], [0], [0], [0, 0, 1, 0], [], []>} : vector<20x11xf32>, vector<128x11xf32>, vector<20x128xf32> -> vector<20x128xf32>
    %c0_3 = arith.constant 0 : index
    %c0_4 = arith.constant 0 : index
    %3 = vector.load %arg3[%c0_3, %c0_4] : memref<20x1xf32, #tpu.memory_space<vmem>>, vector<20x1xf32>
    %4 = vector.broadcast %3 : vector<20x1xf32> to vector<20x128xf32>
    %5 = arith.addf %2, %4 : vector<20x128xf32>
    %6 = math.tanh %5 : vector<20x128xf32>
    %c0_5 = arith.constant 0 : index
    %c0_6 = arith.constant 0 : index
    %7 = vector.load %arg4[%c0_5, %c0_6] : memref<2x20xf32, #tpu.memory_space<vmem>>, vector<2x20xf32>
    %cst_7 = arith.constant dense<0.000000e+00> : vector<2x128xf32>
    %8 = tpu.matmul %7, %6, %cst_7 {dimension_numbers = #tpu.dot_dimension_numbers<[1], [0], [0], [1], [0, 0, 1, 1], [], []>} : vector<2x20xf32>, vector<20x128xf32>, vector<2x128xf32> -> vector<2x128xf32>
    %c0_8 = arith.constant 0 : index
    %c0_9 = arith.constant 0 : index
    %9 = vector.load %arg5[%c0_8, %c0_9] : memref<2x1xf32, #tpu.memory_space<vmem>>, vector<2x1xf32>
    %10 = vector.broadcast %9 : vector<2x1xf32> to vector<2x128xf32>
    %11 = arith.addf %8, %10 : vector<2x128xf32>
    %c0_10 = arith.constant 0 : index
    %c0_11 = arith.constant 0 : index
    %12 = vector.load %arg6[%c0_10, %c0_11] : memref<2x128xf32, #tpu.memory_space<vmem>>, vector<2x128xf32>
    tpu.vector_store %arg6[%c0_10, %c0_11], %11 {strides = array<i32>} : memref<2x128xf32, #tpu.memory_space<vmem>>, vector<2x128xf32>,
    %13 = vector.extract_strided_slice %11 {offsets = [1, 0], sizes = [1, 128], strides = [1, 1]} : vector<2x128xf32> to vector<1x128xf32>
    %14 = vector.extract_strided_slice %11 {offsets = [0, 0], sizes = [1, 128], strides = [1, 1]} : vector<2x128xf32> to vector<1x128xf32>
    %15 = arith.cmpf oge, %13, %14 : vector<1x128xf32>
    %16 = arith.extui %15 : vector<1x128xi1> to vector<1x128xi8>
    %c0_12 = arith.constant 0 : index
    %c0_13 = arith.constant 0 : index
    %17 = vector.load %arg7[%c0_12, %c0_13] : memref<1x128xi8, #tpu.memory_space<vmem>>, vector<1x128xi8>
    tpu.vector_store %arg7[%c0_12, %c0_13], %16 {strides = array<i32>} : memref<1x128xi8, #tpu.memory_space<vmem>>, vector<1x128xi8>,
    return
  }
  func.func @transform_0(%arg0: i32) -> (i32, i32) {
    %c0_i32 = arith.constant 0 : i32
    %c0_i32_0 = arith.constant 0 : i32
    return %arg0, %c0_i32 : i32, i32
  }
  func.func @transform_1(%arg0: i32) -> (i32, i32) {
    %c0_i32 = arith.constant 0 : i32
    %c0_i32_0 = arith.constant 0 : i32
    %c0_i32_1 = arith.constant 0 : i32
    return %c0_i32, %c0_i32_0 : i32, i32
  }
  func.func @transform_2(%arg0: i32) -> (i32, i32) {
    %c0_i32 = arith.constant 0 : i32
    %c0_i32_0 = arith.constant 0 : i32
    %c0_i32_1 = arith.constant 0 : i32
    return %c0_i32, %c0_i32_0 : i32, i32
  }
  func.func @transform_3(%arg0: i32) -> (i32, i32) {
    %c0_i32 = arith.constant 0 : i32
    %c0_i32_0 = arith.constant 0 : i32
    %c0_i32_1 = arith.constant 0 : i32
    return %c0_i32, %c0_i32_0 : i32, i32
  }
  func.func @transform_4(%arg0: i32) -> (i32, i32) {
    %c0_i32 = arith.constant 0 : i32
    %c0_i32_0 = arith.constant 0 : i32
    %c0_i32_1 = arith.constant 0 : i32
    return %c0_i32, %c0_i32_0 : i32, i32
  }
  func.func @transform_5(%arg0: i32) -> (i32, i32) {
    %c0_i32 = arith.constant 0 : i32
    %c0_i32_0 = arith.constant 0 : i32
    return %c0_i32, %arg0 : i32, i32
  }
  func.func @transform_6(%arg0: i32) -> (i32, i32) {
    %c0_i32 = arith.constant 0 : i32
    %c0_i32_0 = arith.constant 0 : i32
    return %c0_i32, %arg0 : i32, i32
  }
}

</mosaic_0001>

<bundles_post_ra>
// kernel: nn_model_fused.1
= control target key start
LH: loop header
LB: loop body
LE: loop exit
PB: predicated region body
PF: predicated region fallthrough
CT: control target
= control target key end

     0   :  { %12 = vsyncpa [#allocation3], 0  ;;  %vm63_vm0 = vcmask 89088   ;;  %v530_v2 = vmov 0.0|0.0   ;;  %vm531_vm2 = vmmov 0   ;;  %v532_v5 = vmov 0.0   ;;  %s705_s0 = inlined_call_operand.vmem [shape: f32[8,11], index: 0, kind: input, shape index: {}]   ;;  %s706_s1 = inlined_call_operand.vmem [shape: f32[20,11], index: 1, kind: input, shape index: {}]   ;;  %s707_s2 = inlined_call_operand.vmem [shape: f32[20,1], index: 2, kind: input, shape index: {}]   ;;  %s708_s3 = inlined_call_operand.vmem [shape: f32[2,20], index: 3, kind: input, shape index: {}]   ;;  %s709_s4 = inlined_call_operand.vmem [shape: f32[2,1], index: 4, kind: input, shape index: {}]   ;;  %s710_s5 = inlined_call_operand.hbm [shape: f32[2,8], index: 5, kind: output, shape index: {0}]   ;;  %s711_s6 = inlined_call_operand.hbm [shape: s8[1,8], index: 6, kind: output, shape index: {1}]  }
   0x1   :  { %v26_v0 = vld [vmem:[%s705_s0] sm:$0xff]  ;;  %v27_v1 = vld [vmem:[%s705_s0 + $0x8] sm:$0xff]  ;;  %433 = vmatprep.subr.bf16.mxu0 %v530_v2  ;;  %vm579_vm1 = vmpackc.low %vm63_vm0, %vm63_vm0  ;;  %465 = vmatprep.subr.bf16.mxu1 %v530_v2  ;;  %v533_v6 = vmov 0  }
   0x2   :  { %v434_v3 = vpack.c.bf16 %v27_v1, %v26_v0  ;;  %415 = vmatprep.mubr.msk.f32.mxu0 %vm531_vm2, %v532_v5  ;;  %474 = vset.pattern.permute.xlu0 %v533_v6  ;;  %v28_v7 = vld [vmem:[%s705_s0 + $0x10] sm:$0xff]  ;;  %v29_v8 = vld [vmem:[%s705_s0 + $0x18] sm:$0xff]  ;;  %v45_v9 = vld [vmem:[%s707_s2] sm:$0xff] }
   0x3   :  { %475 = vset.pattern.permute.xlu1 %v533_v6  ;;  %430 = vmatprep.mubr.msk.f32.mxu1 %vm531_vm2, %v532_v5  ;;  %v438_v10 = vpack.c.bf16 %v29_v8, %v28_v7  ;;  %v47_v11 = vld [vmem:[%s707_s2 + $0x10] sm:$0xf]  ;;  %v46_v12 = vld [vmem:[%s707_s2 + $0x8] sm:$0xff] }
   0x4   :  { %436 = vmatpush3.bf16.xpose.msk.msra.mxu0 %vm579_vm1, %v434_v3  ;;  %50 = vperm.xlu0 %474, %v45_v9  }
   0x5   :  { %437 = vmatprep.subr.bf16.mxu0 %v530_v2  ;;  %60 = vperm.xlu1 %475, %v47_v11  }
   0x6   :  { %13 = vsyncpa [#allocation5], 0  ;;  %v205_v13 = vld [vmem:[%s709_s4] sm:$0x3]  ;;  %v31_v15 = vld [vmem:[%s705_s0 + $0x28] sm:$0xff]  ;;  %vm215_vm3 = vcmask 1043456  }
   0x7   :  { %v30_v14 = vld [vmem:[%s705_s0 + $0x20] sm:$0xff]  ;;  %v32_v17 = vld [vmem:[%s705_s0 + $0x30] sm:$0xff]  ;;  %v33_v18 = vld [vmem:[%s705_s0 + $0x38] sm:$0xff]  ;;  %vm211_vm4 = vcmask 162816   ;;  %s534_s2 = smov [#allocation2]  }
   0x8   :  { %55 = vperm.xlu0 %474, %v46_v12   ;;  %v442_v16 = vpack.c.bf16 %v31_v15, %v30_v14  ;;  %v446_v19 = vpack.c.bf16 %v33_v18, %v32_v17  ;;  %v34_v20 = vld [vmem:[%s705_s0 + $0x40] sm:$0xff]  ;;  %v35_v21 = vld [vmem:[%s705_s0 + $0x48] sm:$0xff]  ;;  %v36_v23 = vld [vmem:[%s705_s0 + $0x50] sm:$0xff]  ;;  %s317_s4 = sshll.u32 %s534_s2, 4  ;;  %s318_s4 = int_to_ptr.vmem [resolvable:$true] %s317_s4 }
   0x9   :  { %208 = vperm.xlu1 %475, %v205_v13   ;;  %v450_v22 = vpack.c.bf16 %v35_v21, %v34_v20  ;;  %v37_v24 = vld [vmem:[%s705_s0 + $0x58] sm:$0xff]  ;;  %v38_v26 = vld [vmem:[%s705_s0 + $0x60] sm:$0xff]  ;;  %v39_v27 = vld [vmem:[%s705_s0 + $0x68] sm:$0xff]  ;;  %s482_s17 = scalar_lea.vmem %s318_s4, 32  ;;  %p487_p1 = scmp.lt.s32.totalorder %s318_s4, %s318_s4 }
   0xa   :  { %v454_v25 = vpack.c.bf16 %v37_v24, %v36_v23  ;;  %v458_v28 = vpack.c.bf16 %v39_v27, %v38_v26  ;;  %v40_v29 = vld [vmem:[%s705_s0 + $0x70] sm:$0xff]  ;;  %v41_v30 = vld [vmem:[%s705_s0 + $0x78] sm:$0xff]  ;;  %v42_v32 = vld [vmem:[%s706_s1] sm:$0xff]  ;;  %p483_p0 = scmp.ne.s32.totalorder %s318_s4, %s482_s17  ;;  %p488_p2 = scmp.lt.s32.totalorder %s482_s17, %s482_s17 }
   0xb   :  { %v462_v31 = vpack.c.bf16 %v41_v30, %v40_v29  ;;  %v43_v33 = vld [vmem:[%s706_s1 + $0x8] sm:$0xff]  ;;  %v44_v34 = vld [vmem:[%s706_s1 + $0x10] sm:$0xf]  ;;  %v204_v51 = vld [vmem:[%s708_s3] sm:$0x3] }
   0xc   :  { %440 = vmatpush3.bf16.xpose.msk.msra.mxu0 %vm579_vm1, %v438_v10  ;;  %p489_p3 = por %p488_p2, %p487_p1 }
   0xd   :  { %441 = vmatprep.subr.bf16.mxu0 %v530_v2 }
   0xe   :  { %p490_p4 = pnand %p489_p3, %p483_p0 }
  0x14   :  { %444 = vmatpush3.bf16.xpose.msk.msra.mxu0 %vm579_vm1, %v442_v16 }
  0x15   :  { %445 = vmatprep.subr.bf16.mxu0 %v530_v2 }
  0x1c   :  { %448 = vmatpush3.bf16.xpose.msk.msra.mxu0 %vm579_vm1, %v446_v19 }
  0x1d   :  { %449 = vmatprep.subr.bf16.mxu0 %v530_v2 }
  0x24   :  { %452 = vmatpush3.bf16.xpose.msk.msra.mxu0 %vm579_vm1, %v450_v22 }
  0x25   :  { %453 = vmatprep.subr.bf16.mxu0 %v530_v2 }
  0x2c   :  { %456 = vmatpush3.bf16.xpose.msk.msra.mxu0 %vm579_vm1, %v454_v25 }
  0x2d   :  { %457 = vmatprep.subr.bf16.mxu0 %v530_v2 }
  0x34   :  { %460 = vmatpush3.bf16.xpose.msk.msra.mxu0 %vm579_vm1, %v458_v28 }
  0x35   :  { %461 = vmatprep.subr.bf16.mxu0 %v530_v2 }
  0x3c   :  { %464 = vmatpush3.bf16.xpose.msk.msra.mxu0 %vm579_vm1, %v462_v31 }
  0x43   :  { %416 = vmatmul.mubr.msk.f32.vlgmr.msra.gmra.mrb[0].mxu0 %vm63_vm0, %v42_v32 }
  0x44   :  { %418 = vmatprep.mubr.msk.f32.mxu0 %vm531_vm2, %v532_v5 }
  0x47   :  { %419 = vmatmul.mubr.msk.f32.gmra.mrb[2].mxu0 %vm63_vm0, %v43_v33 }
  0x48   :  { %421 = vmatprep.mubr.msk.f32.mxu0 %vm531_vm2, %v532_v5 }
  0x4b   :  { %422 = vmatmul.mubr.msk.f32.gmra.mrb[4].mxu0 %vm63_vm0, %v44_v34 }
  0x83   :  { %v51_v35 = vpop.permute.xlu0 %50 }
  0x84   :  { %v61_v43 = vpop.permute.xlu1 %60 }
  0x87   :  { %v56_v39 = vpop.permute.xlu0 %55 }
  0x88   :  { %v209_v52 = vpop.permute.xlu1 %208 }
 0x116   :  { %v187_v36 = vpop.f32.mrb[0].mxu0 }
 0x117   :  { %v417_v37 = vpop.f32.mrb[1].mxu0  ;;  %v188_v38 = vadd.f32 %v187_v36, %v51_v35 }
 0x119   :  { %476 = vtanh.f32 %v188_v38 }
 0x11a   :  { %v192_v40 = vpop.f32.mrb[2].mxu0 }
 0x11b   :  { %v193_v41 = vadd.f32 %v192_v40, %v56_v39  ;;  %v420_v42 = vpop.f32.mrb[3].mxu0 }
 0x11d   :  { %478 = vtanh.f32 %v193_v41 }
 0x11e   :  { %v197_v44 = vpop.f32.mrb[4].mxu0 }
 0x11f   :  { %v198_v45 = vadd.f32 %v197_v44, %v61_v43  ;;  %v423_v46 = vpop.f32.mrb[5].mxu0 }
 0x121   :  { %480 = vtanh.f32 %v198_v45 }
 0x123   :  { %v477_v47 = vpop.eup %476 }
 0x127   :  { %v479_v48 = vpop.eup %478 }
 0x128   :  { %v466_v49 = vpack.c.bf16 %v479_v48, %v477_v47 }
 0x12a   :  { %467 = vmatpush3.bf16.msra.mxu1 %v466_v49 }
 0x12b   :  { %v481_v50 = vpop.eup %480  ;;  %428 = vmatprep.subr.mxu1 %v532_v5 }
 0x12e   :  { %429 = vmatpush3.msk.msra.mxu1 %vm215_vm3, %v481_v50 }
 0x12f   :  { %431 = vmatmul.mubr.msk.f32.vlgmr.msra.gmra.mrb[0].mxu1 %vm211_vm4, %v204_v51 }
 0x202   :  { %v285_v53 = vpop.f32.mrb[0].mxu1 }
 0x203   :  { %v286_v54 = vadd.f32 %v285_v53, %v209_v52  ;;  %v432_v55 = vpop.f32.mrb[1].mxu1 }
 0x205   :  { %v291_v56 = vrot.slane %v286_v54, 7  ;;  %289 = vst [vmem:[#allocation2] sm:$0x3] %v286_v54 }
 0x206   :  { %493 = shalt.err (!%p490_p4)
}
 0x207   :  { %s494_s19 = scalar_lea.hbm %s710_s5, 32 }
 0x208   :  { %p495_p5 = scmp.ne.s32.totalorder %s710_s5, %s494_s19  ;;  %p498_p6 = scmp.lt.u32.totalorder %s494_s19, %s710_s5 }
 0x20a   :  { %p500_p7 = pnand %p498_p6, %p495_p5 }
 0x20c   :  { %503 = shalt.err (!%p500_p7)
}
 0x20d   :  { %320 = dma.vmem_to_hbm [thread:$0]  %s318_s4, 32, %s710_s5, [#allocation3]   ;;  %vm293_vm5 = vcmp.ge.f32.partialorder %v286_v54, %v291_v56  ;;  %vm305_vm8 = vcmask 1040384   ;;  %vm306_vm9 = vsmask.f32 0 }
 0x20e   :  { %vm294_vm6 = vmpackc.low %vm293_vm5, %vm293_vm5  ;;  %s535_s26 = smov [#allocation4]   ;;  %v308_v62 = vld [vmem:[#allocation4] sm:$0x1] }
 0x20f   :  { %vm295_vm7 = vmpackc.even %vm294_vm6, %vm294_vm6  ;;  %s327_s27 = sshll.u32 %s535_s26, 4  ;;  %s328_s27 = int_to_ptr.vmem [resolvable:$true] %s327_s27 }
 0x210   :  { %v296_v57 = vsel %vm295_vm7, 16843009, %v533_v6  ;;  %vm307_vm10 = vmand %vm305_vm8, %vm306_vm9  ;;  %s504_s5 = scalar_lea.vmem %s328_s27, 16  ;;  %s508_s28 = scalar_lea.vmem %s328_s27, 32 }
 0x211   :  { %v297_v58 = vunpack.c.0.s8 %v296_v57  ;;  %p505_p8 = scmp.ne.s32.totalorder %s328_s27, %s504_s5  ;;  %p509_p9 = scmp.lt.s32.totalorder %s328_s27, %s328_s27 }
 0x212   :  { %p510_p10 = scmp.lt.s32.totalorder %s508_s28, %s504_s5 }
 0x213   :  { %v298_v59 = vpack.c.b16 %v297_v58, %v297_v58 }
 0x214   :  { %p511_p11 = por %p510_p10, %p509_p9 }
 0x215   :  { %v299_v60 = vpack.c.b8 %v298_v59, %v298_v59 }
 0x216   :  { %p512_p12 = pnand %p511_p11, %p505_p8 }
 0x217   :  { %v301_v61 = vshrl.u32 %v299_v60, 8 }
 0x219   :  { %vm303_vm11 = vnez %v301_v61 }
 0x21a   :  { %v304_v63 = vsel %vm303_vm11, 16843009, %v533_v6 }
 0x21b   :  { %v309_v0 = vsel %vm307_vm10, %v304_v63, %v308_v62 }
 0x21c   :  { %310 = vst [vmem:[#allocation4] sm:$0x1] %v309_v0 }
 0x21d   :  { %515 = shalt.err (!%p512_p12)
}
 0x21e   :  { %s516_s7 = scalar_lea.hbm %s711_s6, 16 }
 0x21f   :  { %p517_p13 = scmp.ne.s32.totalorder %s711_s6, %s516_s7  ;;  %p520_p0 = scmp.lt.u32.totalorder %s516_s7, %s711_s6 }
 0x221   :  { %p522_p1 = pnand %p520_p0, %p517_p13 }
 0x223   :  { %525 = shalt.err (!%p522_p1)
}
 0x224   :  { %330 = dma.vmem_to_hbm [thread:$0]  %s328_s27, 16, %s711_s6, [#allocation5]  }
 0x225   :  { %526 = dma.done.wait [#allocation3], 32  }
 0x226   :  { %527 = vsyncadd [#allocation3], 4294967264 }
 0x227   :  { %528 = dma.done.wait [#allocation5], 16  }
 0x228   :  { %529 = vsyncadd [#allocation5], 4294967280 }
 0x229   :  { %337 = vsyncpa [#allocation3], 1 }
 0x22a   :  { %338 = vsyncpa [#allocation5], 1 }

</bundles_post_ra>
